<compile_context>
chip_gen: v7x
topology: tpu7x:2x2x1
jax: 0.10.0
libtpu: 0.0.40
codegen_flags: <defaults>
</compile_context>

<pallas_src>
import functools

import jax
import jax.numpy as jnp
from jax.experimental import pallas as pl
from jax.experimental.pallas import tpu as pltpu


# ----------------------------------------------------------------------------
# Kernel
# ----------------------------------------------------------------------------
def _l2norm_kernel(x_ref, o_ref, *, eps, scale_in_input_dtype):
    x = x_ref[...]
    xf = x.astype(jnp.float32)                       # matches x.float()
    ms = jnp.mean(xf * xf, axis=-1, keepdims=True)   # mean of squares (f32)
    inv = jax.lax.rsqrt(ms + eps)                    # rsqrt -> EUP
    if scale_in_input_dtype:
        # bf16/f16 path: keep bulk elementwise work in the input dtype
        # (smaller VMEM/vreg footprint on v6e/v7x; tiny numeric delta).
        o_ref[...] = (x * inv.astype(x.dtype)).astype(o_ref.dtype)
    else:
        o_ref[...] = (xf * inv).astype(o_ref.dtype)  # .type_as(x)


# ----------------------------------------------------------------------------
# Sizing helpers
# ----------------------------------------------------------------------------
def _vmem_limit_bytes():
    """Scoped-VMEM request derived from the chip's physical VMEM."""
    try:
        cap = int(pltpu.get_tpu_info().vmem_capacity_bytes)
    except Exception:
        cap = 64 << 20  # conservative fallback (v7x per-TC VMEM)
    # Half of physical VMEM, clamped to a sane range:
    #   v7x (64 MiB)  -> 32 MiB     v5e/v6e (128 MiB) -> 64 MiB
    return max(16 << 20, min(cap // 2, 64 << 20))


def _choose_block_rows(rows, hidden, itemsize, tile_budget_bytes):
    """Largest row-tile fitting the budget, aligned to dtype packing."""
    # Packed sublane granularity: 8 rows (f32), 16 (bf16/f16), 32 (int8/fp8).
    row_align = max(8, 32 // max(1, itemsize))

    # Conservative per-row footprint: double-buffered input + output
    # (2 * 2 * itemsize per elem) plus ~8 B/elem of f32 intermediates.
    bytes_per_row = hidden * (4 * itemsize + 8)
    max_rows = int(tile_budget_bytes // bytes_per_row)
    max_rows = min(max_rows, 32768)
    max_rows = (max_rows // row_align) * row_align
    max_rows = max(max_rows, row_align)

    if rows <= max_rows:
        if rows >= 4 * row_align:
            # Split into >=2 grid steps so both v7x TensorCores get work.
            half = (rows + 1) // 2
            block_rows = ((half + row_align - 1) // row_align) * row_align
            return min(block_rows, rows)
        # Small enough: single full-extent block (legal for any row count).
        return rows
    return max_rows


# ----------------------------------------------------------------------------
# Wrapper
# ----------------------------------------------------------------------------
def _l2norm_jnp(x, eps):
    xf = x.astype(jnp.float32)
    inv = jax.lax.rsqrt(jnp.mean(xf * xf, axis=-1, keepdims=True) + eps)
    return (xf * inv).astype(x.dtype)


def llama4_text_l2_norm(x, *, eps=1e-6, block_rows=None, min_pallas_elems=4096):
    orig_shape = x.shape
    hidden = orig_shape[-1]
    rows = 1
    for d in orig_shape[:-1]:
        rows *= d

    # Tiny / empty inputs: pallas_call launch overhead dominates -> plain jnp.
    if rows == 0 or rows * hidden < min_pallas_elems:
        return _l2norm_jnp(x, eps)

    x2d = x.reshape(rows, hidden)
    itemsize = jnp.dtype(x.dtype).itemsize

    vmem_limit = _vmem_limit_bytes()
    tile_budget = (vmem_limit * 3) // 4  # leave 25% headroom for compiler scratch

    if block_rows is None:
        block_rows = _choose_block_rows(rows, hidden, itemsize, tile_budget)
    block_rows = min(block_rows, rows)

    grid = (pl.cdiv(rows, block_rows),)  # ragged final block handled by Pallas
    kernel = functools.partial(
        _l2norm_kernel,
        eps=eps,
        scale_in_input_dtype=(itemsize == 2),
    )

    out = pl.pallas_call(
        kernel,
        out_shape=jax.ShapeDtypeStruct((rows, hidden), x.dtype),
        grid_spec=pltpu.PrefetchScalarGridSpec(
            num_scalar_prefetch=0,
            grid=grid,
            in_specs=[pl.BlockSpec((block_rows, hidden), lambda i: (i, 0))],
            out_specs=pl.BlockSpec((block_rows, hidden), lambda i: (i, 0)),
        ),
        compiler_params=pltpu.CompilerParams(
            dimension_semantics=("parallel",),
            vmem_limit_bytes=vmem_limit,
        ),
        cost_estimate=pl.CostEstimate(
            flops=3 * rows * hidden,
            transcendentals=rows,
            bytes_accessed=2 * rows * hidden * itemsize,
        ),
    )(x2d)

    return out.reshape(orig_shape)


# ----------------------------------------------------------------------------
# Reference + self-test
# ----------------------------------------------------------------------------
def _reference(x, eps=1e-6):
    xf = x.astype(jnp.float32)
    return (xf * jax.lax.rsqrt(jnp.mean(xf * xf, axis=-1, keepdims=True) + eps)
            ).astype(x.dtype)


if __name__ == "__main__":
    key = jax.random.PRNGKey(0)

    # Small shape consistent with the module's QK-norm use: [batch, seq, head_dim].
    batch, seq, hidden = 2, 16, 128
    x = jax.random.normal(key, (batch, seq, hidden), dtype=jnp.bfloat16)

    y = llama4_text_l2_norm(x)
    jax.block_until_ready(y)
    ref = _reference(x)
    assert y.shape == x.shape and y.dtype == x.dtype
    assert jnp.allclose(y.astype(jnp.float32), ref.astype(jnp.float32),
                        atol=1e-2, rtol=1e-2)

    # Ragged-last-block path (rows=21 not divisible by block_rows=8), f32.
    x2 = jax.random.normal(jax.random.PRNGKey(1), (3, 7, 256), dtype=jnp.float32)
    y2 = llama4_text_l2_norm(x2, block_rows=8)
    jax.block_until_ready(y2)
    assert jnp.allclose(y2, _reference(x2), atol=1e-5, rtol=1e-5)

    # Auto tile-size path with many rows (exercises multi-step grid).
    x3 = jax.random.normal(jax.random.PRNGKey(2), (4, 64, 128), dtype=jnp.bfloat16)
    y3 = llama4_text_l2_norm(x3)
    jax.block_until_ready(y3)
    assert jnp.allclose(y3.astype(jnp.float32), _reference(x3).astype(jnp.float32),
                        atol=1e-2, rtol=1e-2)

    # Tiny-input jnp fallback and zero-sized input.
    x4 = jax.random.normal(jax.random.PRNGKey(3), (1, 2, 128), dtype=jnp.float32)
    y4 = llama4_text_l2_norm(x4)
    jax.block_until_ready(y4)
    assert jnp.allclose(y4, _reference(x4), atol=1e-5, rtol=1e-5)

    x5 = jnp.zeros((0, 8, 128), dtype=jnp.float32)
    y5 = llama4_text_l2_norm(x5)
    assert y5.shape == x5.shape

    print("KERNEL_OK")
</pallas_src>

<mosaic_0001>
module attributes {stable_mosaic.version = 11 : i64} {
  func.func @_l2norm_kernel(%arg0: i32, %arg1: memref<32x128xbf16, #tpu.memory_space<vmem>>, %arg2: memref<32x128xbf16, #tpu.memory_space<vmem>>) attributes {dimension_semantics = [#tpu.dimension_semantics<parallel>], iteration_bounds = array<i64: 1>, scalar_prefetch = 0 : i64, scratch_operands = 0 : i64, tpu.core_type = #tpu.core_type<tc>, window_params = [{transform_indices = @transform_0, window_bounds = array<i64: 32, 128>}, {transform_indices = @transform_1, window_bounds = array<i64: 32, 128>}]} {
    %c0 = arith.constant 0 : index
    %c0_0 = arith.constant 0 : index
    %0 = vector.load %arg1[%c0, %c0_0] : memref<32x128xbf16, #tpu.memory_space<vmem>>, vector<32x128xbf16>
    %1 = arith.extf %0 : vector<32x128xbf16> to vector<32x128xf32>
    %2 = arith.mulf %1, %1 : vector<32x128xf32>
    %cst = arith.constant dense<0.000000e+00> : vector<32xf32>
    %3 = vector.multi_reduction <add>, %2, %cst [1] : vector<32x128xf32> to vector<32xf32>
    %4 = vector.shape_cast %3 : vector<32xf32> to vector<32x1xf32>
    %cst_1 = arith.constant 1.280000e+02 : f32
    %5 = vector.broadcast %cst_1 : f32 to vector<32x1xf32>
    %6 = arith.divf %4, %5 : vector<32x1xf32>
    %cst_2 = arith.constant 9.99999997E-7 : f32
    %7 = vector.broadcast %cst_2 : f32 to vector<32x1xf32>
    %8 = arith.addf %6, %7 : vector<32x1xf32>
    %9 = math.rsqrt %8 : vector<32x1xf32>
    %10 = arith.truncf %9 : vector<32x1xf32> to vector<32x1xbf16>
    %11 = vector.broadcast %10 : vector<32x1xbf16> to vector<32x128xbf16>
    %12 = arith.mulf %0, %11 : vector<32x128xbf16>
    %c0_3 = arith.constant 0 : index
    %c0_4 = arith.constant 0 : index
    %13 = vector.load %arg2[%c0_3, %c0_4] : memref<32x128xbf16, #tpu.memory_space<vmem>>, vector<32x128xbf16>
    tpu.vector_store %arg2[%c0_3, %c0_4], %12 {strides = array<i32>} : memref<32x128xbf16, #tpu.memory_space<vmem>>, vector<32x128xbf16>,
    return
  }
  func.func @transform_0(%arg0: i32) -> (i32, i32) {
    %c0_i32 = arith.constant 0 : i32
    %c0_i32_0 = arith.constant 0 : i32
    return %arg0, %c0_i32 : i32, i32
  }
  func.func @transform_1(%arg0: i32) -> (i32, i32) {
    %c0_i32 = arith.constant 0 : i32
    %c0_i32_0 = arith.constant 0 : i32
    return %arg0, %c0_i32 : i32, i32
  }
}

</mosaic_0001>

<bundles_post_ra>
// kernel: tpu_custom_call.1
= control target key start
LH: loop header
LB: loop body
LE: loop exit
PB: predicated region body
PF: predicated region fallthrough
CT: control target
= control target key end

     0   :  { %6 = vsyncpa [#allocation3], 0  ;;  %s238_s0 = inlined_call_operand.hbm [shape: bf16[32,128], index: 0, kind: input, shape index: {}]   ;;  %s239_s1 = inlined_call_operand.hbm [shape: bf16[32,128], index: 1, kind: output, shape index: {}]  }
   0x1   :  { %7 = vsyncpa [#allocation4], 0  ;;  %s192_s6 = smov [#allocation2]   ;;  %s144_s10 = scalar_lea.hbm %s238_s0, 256 }
   0x2   :  { %s13_s7 = sshll.u32 %s192_s6, 4  ;;  %p145_p0 = scmp.ne.s32.totalorder %s238_s0, %s144_s10  ;;  %s14_s7 = int_to_ptr.vmem [resolvable:$true] %s13_s7 }
   0x3   :  { %p148_p1 = scmp.lt.u32.totalorder %s144_s10, %s238_s0 }
   0x5   :  { %p150_p2 = pnand %p148_p1, %p145_p0 }
   0x7   :  { %153 = shalt.err (!%p150_p2)
}
   0x8   :  { %s154_s15 = scalar_lea.vmem %s14_s7, 256  ;;  %p159_p4 = scmp.lt.s32.totalorder %s14_s7, %s14_s7 }
   0x9   :  { %p155_p3 = scmp.ne.s32.totalorder %s14_s7, %s154_s15  ;;  %p160_p5 = scmp.lt.s32.totalorder %s154_s15, %s154_s15 }
   0xb   :  { %p161_p6 = por %p160_p5, %p159_p4 }
   0xd   :  { %p162_p7 = pnand %p161_p6, %p155_p3 }
   0xf   :  { %165 = shalt.err (!%p162_p7)
}
  0x10   :  { %s193_s16 = smov 64   ;;  %s194_s17 = smov 4  }
  0x11   :  { %19 = dma.hbm_to_vmem [thread:$0]  %s238_s0, 256, %s14_s7, [#allocation3], %s193_s16, %s193_s16, %s194_s17  }
  0x12   :  { %188 = dma.done.wait [#allocation3], 256  }
  0x13   :  { %189 = vsyncadd [#allocation3], 4294967040  ;;  %v25_v0 = vld [vmem:[#allocation2 + $0x8] sm:$0xf]  ;;  %v23_v1 = vld [vmem:[#allocation2] sm:$0xf]  ;;  %v63_v26 = vlaneseq }
  0x14   :  { %v26_v2 = vld [vmem:[#allocation2 + $0xc] sm:$0xf]  ;;  %v29_v3 = vunpack.c.l.bf16 %v25_v0  ;;  %v27_v4 = vunpack.c.l.bf16 %v23_v1  ;;  %v24_v6 = vld [vmem:[#allocation2 + $0x4] sm:$0xf]  ;;  %v195_v24 = vmov 839922192  }
  0x15   :  { %v30_v5 = vunpack.c.l.bf16 %v26_v2  ;;  %v28_v7 = vunpack.c.l.bf16 %v24_v6  ;;  %v61_v25 = vunpack.c.l.s4 %v195_v24  ;;  %v196_v27 = vmov 1985246804   ;;  %s197_s0 = smov [#allocation5]  }
  0x16   :  { %v33_v8 = vmul.f32 %v29_v3, %v29_v3  ;;  %v31_v9 = vmul.f32 %v27_v4, %v27_v4  ;;  %v68_v28 = vunpack.c.l.s4 %v196_v27  ;;  %v64_v30 = vshrl.u32 %v63_v26, 7  ;;  %s105_s20 = sshll.u32 %s197_s0, 4  ;;  %s106_s20 = int_to_ptr.vmem [resolvable:$true] %s105_s20 }
  0x17   :  { %v34_v10 = vmul.f32 %v30_v5, %v30_v5  ;;  %v32_v11 = vmul.f32 %v28_v7, %v28_v7  ;;  %v62_v29 = vunpack.c.0.s8 %v61_v25  ;;  %s166_s21 = scalar_lea.vmem %s106_s20, 256  ;;  %p171_p9 = scmp.lt.s32.totalorder %s106_s20, %s106_s20 }
  0x18   :  { %39 = vadd.xlane.f32.xlu1 %v33_v8  ;;  %35 = vadd.xlane.f32.xlu0 %v31_v9  ;;  %v69_v31 = vunpack.c.0.s8 %v68_v28  ;;  %p167_p8 = scmp.ne.s32.totalorder %s106_s20, %s166_s21  ;;  %p172_p10 = scmp.lt.s32.totalorder %s166_s21, %s166_s21 }
  0x19   :  { %v65_v34 = vsub.s32 %v62_v29, %v64_v30 }
  0x1a   :  { %v72_v35 = vsub.s32 %v69_v31, %v64_v30  ;;  %p173_p11 = por %p172_p10, %p171_p9 }
  0x1c   :  { %41 = vadd.xlane.f32.xlu1 %v34_v10  ;;  %37 = vadd.xlane.f32.xlu0 %v32_v11  ;;  %p174_p12 = pnand %p173_p11, %p167_p8 }
  0xa5   :  { %v40_v12 = vpop.xlane.xlu1 %39  ;;  %v36_v13 = vpop.xlane.xlu0 %35 }
  0xa6   :  { %v46_v14 = vmul.f32 0.0078125, %v40_v12  ;;  %v44_v15 = vmul.f32 0.0078125, %v36_v13 }
  0xa8   :  { %v50_v16 = vadd.f32 1e-06, %v46_v14  ;;  %v48_v17 = vadd.f32 1e-06, %v44_v15 }
  0xa9   :  { %v42_v18 = vpop.xlane.xlu1 %41  ;;  %v38_v19 = vpop.xlane.xlu0 %37 }
  0xaa   :  { %v47_v20 = vmul.f32 0.0078125, %v42_v18  ;;  %v45_v21 = vmul.f32 0.0078125, %v38_v19  ;;  %136 = vrsqrt.f32 %v50_v16 }
  0xab   :  { %138 = vrsqrt.f32 %v48_v17 }
  0xac   :  { %v51_v22 = vadd.f32 1e-06, %v47_v20  ;;  %v49_v23 = vadd.f32 1e-06, %v45_v21 }
  0xae   :  { %140 = vrsqrt.f32 %v51_v22 }
  0xaf   :  { %142 = vrsqrt.f32 %v49_v23 }
  0xb4   :  { %v137_v32 = vpop.eup %136 }
  0xb5   :  { %v139_v33 = vpop.eup %138 }
  0xb8   :  { %v141_v36 = vpop.eup %140 }
  0xb9   :  { %v143_v37 = vpop.eup %142  ;;  %v57_v38 = vpack.c.bf16 %v141_v36, %v137_v32 }
  0xba   :  { %v56_v39 = vpack.c.bf16 %v143_v37, %v139_v33 }
  0xbb   :  { %v80_v40 = vrot.slane %v57_v38, %v65_v34  ;;  %v87_v41 = vrot.slane %v57_v38, %v72_v35 }
  0xbc   :  { %v66_v42 = vrot.slane %v56_v39, %v65_v34  ;;  %v73_v43 = vrot.slane %v56_v39, %v72_v35 }
  0xbd   :  { %v94_v44 = vmul.bf16 %v80_v40, %v25_v0  ;;  %v95_v45 = vmul.bf16 %v87_v41, %v26_v2 }
  0xbe   :  { %v92_v46 = vmul.bf16 %v66_v42, %v23_v1  ;;  %v93_v47 = vmul.bf16 %v73_v43, %v24_v6 }
  0xbf   :  { %v128_v48 = vcombine.low %v94_v44, %v95_v45 }
  0xc0   :  { %v127_v49 = vcombine.low %v92_v46, %v93_v47 }
  0xc1   :  { %129 = vst [vmem:[#allocation5 + $0x8] sm:$0xff] %v128_v48  }
  0xc2   :  { %121 = vst [vmem:[#allocation5] sm:$0xff] %v127_v49  }
  0xc3   :  { %177 = shalt.err (!%p174_p12)
}
  0xc4   :  { %s178_s24 = scalar_lea.hbm %s239_s1, 256 }
  0xc5   :  { %p179_p13 = scmp.ne.s32.totalorder %s239_s1, %s178_s24  ;;  %p182_p0 = scmp.lt.u32.totalorder %s178_s24, %s239_s1 }
  0xc7   :  { %p184_p1 = pnand %p182_p0, %p179_p13 }
  0xc9   :  { %187 = shalt.err (!%p184_p1)
}
  0xca   :  { %111 = dma.vmem_to_hbm [thread:$0]  %s106_s20, 256, %s239_s1, [#allocation4], %s193_s16, %s193_s16, %s194_s17  }
  0xcb   :  { %190 = dma.done.wait [#allocation4], 256  }
  0xcc   :  { %191 = vsyncadd [#allocation4], 4294967040 }
  0xcd   :  { %115 = vsyncpa [#allocation3], 1 }
  0xce   :  { %116 = vsyncpa [#allocation4], 1 }

</bundles_post_ra>
